<compile_context>
chip_gen: v7x
topology: tpu7x:2x2x1
jax: 0.10.0
libtpu: 0.0.40
codegen_flags: <defaults>
</compile_context>

<pallas_src>
import math

import jax
import jax.numpy as jnp
from jax import lax
from jax.experimental import pallas as pl
from jax.experimental.pallas import tpu as pltpu


# --------------------------------------------------------------------------
# VMEM limit: derive from the chip (leave headroom), conservative fallback.
# --------------------------------------------------------------------------
_VMEM_LIMIT_CACHE = None


def _vmem_limit():
    global _VMEM_LIMIT_CACHE
    if _VMEM_LIMIT_CACHE is None:
        try:
            cap = int(pltpu.get_tpu_info().vmem_capacity_bytes)
            lim = min(cap - (8 << 20), 100 << 20)
        except Exception:  # pragma: no cover - query not available
            lim = 48 << 20
        _VMEM_LIMIT_CACHE = max(lim, 32 << 20)
    return _VMEM_LIMIT_CACHE


# --------------------------------------------------------------------------
# pltpu.roll shift-convention probe (review correctness concern #1).
# --------------------------------------------------------------------------
_ROLL_LIKE_JNP = None


def _roll_like_jnp():
    """True iff pltpu.roll(x, s, axis) == jnp.roll(x, s, axis). Run eagerly."""
    global _ROLL_LIKE_JNP
    if _ROLL_LIKE_JNP is None:
        def probe(x_ref, o_ref):
            o_ref[...] = pltpu.roll(x_ref[...], shift=1, axis=0)

        x = jnp.arange(8 * 128, dtype=jnp.float32).reshape(8, 128)
        y = pl.pallas_call(
            probe, out_shape=jax.ShapeDtypeStruct((8, 128), jnp.float32))(x)
        _ROLL_LIKE_JNP = bool(jnp.array_equal(y, jnp.roll(x, 1, axis=0)))
    return _ROLL_LIKE_JNP


# --------------------------------------------------------------------------
# Fused decoder-stage kernel: [skip ++ up] -> (Conv3d+IN+ReLU)^n [-> upconv].
# One grid step = `batch_block` samples, whole spatial volume, all channels.
# --------------------------------------------------------------------------
def _stage_kernel_factory(D, H, W, n_convs, has_up, batch_block, roll_like):
    rows = D * H * W
    HW = H * W

    def shift_rows(x, off):
        """Returns y with y[r] = x[(r + off) % rows]."""
        off = off % rows
        if off == 0:
            return x
        shift = (rows - off) if roll_like else off
        return pltpu.roll(x, shift=shift, axis=0)

    def kernel(skip_ref, up_ref, *rest):
        conv_refs = rest[:n_convs]
        if has_up:
            up_w_ref = rest[n_convs]
            up_b_ref = rest[n_convs + 1]
        o_ref = rest[-1]

        # Row coordinates & boundary masks (shared by every conv of the stage).
        r = lax.broadcasted_iota(jnp.int32, (rows, 1), 0)
        ww = r % W
        hh = (r // W) % H
        dd = r // HW
        keep_w = {1: ww >= 1, -1: ww <= W - 2}        # input-side (ow) masks
        md = {1: (dd <= D - 2).astype(jnp.float32),
              -1: (dd >= 1).astype(jnp.float32)}
        mh = {1: (hh <= H - 2).astype(jnp.float32),
              -1: (hh >= 1).astype(jnp.float32)}

        def _out_mask(od, oh):
            if od == 0 and oh == 0:
                return None
            if od == 0:
                return mh[oh]
            if oh == 0:
                return md[od]
            return md[od] * mh[oh]

        masks = {(od, oh): _out_mask(od, oh)
                 for od in (-1, 0, 1) for oh in (-1, 0, 1)}

        def conv_in_relu(parts, w_ref):
            """3x3x3 'same' conv (no bias) + InstanceNorm + ReLU.

            parts : list of (rows, Cin_i) float32 (implicit channel concat).
            w_ref : (3, 3*sum(Cin_i), 3*Cout) bf16 with
                    [kd, kw*Cin + ci, kh*Cout + co] = W_pt[co, ci, kd, kh, kw].
            """
            cout = w_ref.shape[-1] // 3

            # K axis: three masked/rolled w-offset variants, lane-concatenated.
            variants = []
            for ow in (-1, 0, 1):
                for p in parts:
                    z = p if ow == 0 else jnp.where(keep_w[ow], p, 0.0)
                    if ow != 0:
                        z = shift_rows(z, ow)
                    variants.append(z.astype(jnp.bfloat16))
            xw = jnp.concatenate(variants, axis=-1)            # (rows, 3*Cin)

            acc = jnp.zeros((rows, cout), jnp.float32)
            for a, od in enumerate((-1, 0, 1)):
                q3 = jnp.dot(xw, w_ref[a],
                             preferred_element_type=jnp.float32)  # (rows,3*Cout)
                for hj, oh in enumerate((-1, 0, 1)):
                    q = q3[:, hj * cout:(hj + 1) * cout]
                    q = shift_rows(q, od * HW + oh * W)   # multiple-of-W shift
                    m = masks[(od, oh)]
                    acc = acc + (q if m is None else q * m)

            # InstanceNorm3d (biased variance, eps=1e-5, no affine) + ReLU.
            mean = jnp.mean(acc, axis=0, keepdims=True)
            cen = acc - mean
            var = jnp.mean(cen * cen, axis=0, keepdims=True)
            return jnp.maximum(cen * lax.rsqrt(var + 1e-5), 0.0)

        for b in range(batch_block):
            y = conv_in_relu([skip_ref[b], up_ref[b]], conv_refs[0])
            for ci in range(1, n_convs):
                y = conv_in_relu([y], conv_refs[ci])
            if has_up:
                # Fused ConvTranspose3d(k=2, s=2): 8 parity-plane matmuls on
                # the in-VMEM decoder output (interleave happens as XLA glue).
                yb = y.astype(jnp.bfloat16)
                bias = up_b_ref[...]
                for p in range(8):
                    o_ref[b, p, :, :] = (
                        jnp.dot(yb, up_w_ref[p],
                                preferred_element_type=jnp.float32) + bias)
            else:
                o_ref[b, :, :] = y

    return kernel


def decoder_stage(skip, up, conv_ws, spatial, *, up_w=None, up_b=None,
                  batch_block=1):
    """skip: (N, rows, Cs) f32, up: (N, rows, Cu) f32, rows = D*H*W.
    conv_ws: list of (3, 3*Cin_i, 3*Cout_i) bf16 weights.
    If up_w is given ((8, C, C) bf16, up_b (1, C) f32) the stage also applies
    the following ConvTranspose3d and returns parity planes (N, 8, rows, C);
    otherwise it returns (N, rows, Cout_last) f32."""
    D, H, W = spatial
    n, rows, cs = skip.shape
    cu = up.shape[-1]
    assert rows == D * H * W and n % batch_block == 0
    n_convs = len(conv_ws)
    has_up = up_w is not None
    grid = (n // batch_block,)

    in_specs = [
        pl.BlockSpec((batch_block, rows, cs), lambda b: (b, 0, 0)),
        pl.BlockSpec((batch_block, rows, cu), lambda b: (b, 0, 0)),
    ]
    operands = [skip, up]
    for w in conv_ws:
        in_specs.append(pl.BlockSpec(w.shape, lambda b: (0, 0, 0)))
        operands.append(w)
    if has_up:
        in_specs.append(pl.BlockSpec(up_w.shape, lambda b: (0, 0, 0)))
        in_specs.append(pl.BlockSpec(up_b.shape, lambda b: (0, 0)))
        operands.extend([up_w, up_b])
        c_up = up_w.shape[-1]
        out_shape = jax.ShapeDtypeStruct((n, 8, rows, c_up), jnp.float32)
        out_spec = pl.BlockSpec((batch_block, 8, rows, c_up),
                                lambda b: (b, 0, 0, 0))
    else:
        c_last = conv_ws[-1].shape[-1] // 3
        out_shape = jax.ShapeDtypeStruct((n, rows, c_last), jnp.float32)
        out_spec = pl.BlockSpec((batch_block, rows, c_last),
                                lambda b: (b, 0, 0))

    roll_like = True if _ROLL_LIKE_JNP is None else _ROLL_LIKE_JNP
    kernel = _stage_kernel_factory(D, H, W, n_convs, has_up, batch_block,
                                   roll_like)
    sem = ("arbitrary",) if grid[0] == 1 else ("parallel",)
    return pl.pallas_call(
        kernel,
        out_shape=out_shape,
        grid=grid,
        in_specs=in_specs,
        out_specs=out_spec,
        compiler_params=pltpu.CompilerParams(
            dimension_semantics=sem, vmem_limit_bytes=_vmem_limit()),
    )(*operands)


# --------------------------------------------------------------------------
# Stand-alone ConvTranspose3d(k=2, s=2) + bias for the first up-conv (up3),
# producing parity planes (N, 8, rows_lo, C); interleave stays as XLA glue.
# --------------------------------------------------------------------------
def up_conv2x_planes(x, w, bias):
    """x: (N, rows_lo, C) f32; w: (8, C, C) bf16; bias: (1, C) f32."""
    n, rows, c = x.shape

    def kernel(x_ref, w_ref, b_ref, o_ref):
        bvec = b_ref[...]
        for s in range(n):
            xv = x_ref[s].astype(jnp.bfloat16)
            for p in range(8):
                o_ref[s, p, :, :] = (
                    jnp.dot(xv, w_ref[p],
                            preferred_element_type=jnp.float32) + bvec)

    return pl.pallas_call(
        kernel,
        out_shape=jax.ShapeDtypeStruct((n, 8, rows, c), jnp.float32),
        grid=(1,),
        in_specs=[pl.BlockSpec((n, rows, c), lambda i: (0, 0, 0)),
                  pl.BlockSpec(w.shape, lambda i: (0, 0, 0)),
                  pl.BlockSpec(bias.shape, lambda i: (0, 0))],
        out_specs=pl.BlockSpec((n, 8, rows, c), lambda i: (0, 0, 0, 0)),
        compiler_params=pltpu.CompilerParams(
            dimension_semantics=("arbitrary",),
            vmem_limit_bytes=_vmem_limit()),
    )(x, w, bias)


# --------------------------------------------------------------------------
# XLA glue: stride-2 interleave of parity planes, and NCDHW <-> flattened
# channels-last layout prep.
# --------------------------------------------------------------------------
def _interleave(planes, lo_spatial):
    """planes: (N, 8, rows_lo, C) with p = (i*2+j)*2+k -> (N, 8*rows_lo, C)
    at the doubled resolution, row-major."""
    n, _, rows, c = planes.shape
    D, H, W = lo_spatial
    y = planes.reshape(n, 2, 2, 2, D, H, W, c)
    y = jnp.transpose(y, (0, 4, 1, 5, 2, 6, 3, 7))
    return y.reshape(n, 8 * rows, c)


def _prep(t):
    """NCDHW f32 -> flattened channels-last (N, D*H*W, C) f32."""
    n, c, d, h, w = t.shape
    return jnp.transpose(t, (0, 2, 3, 4, 1)).reshape(n, d * h * w, c), (d, h, w)


# --------------------------------------------------------------------------
# Parameters: synthetic init in PyTorch layout (f32) + kernel-layout prep.
# --------------------------------------------------------------------------
def init_params(key, out_channels):
    keys = iter(jax.random.split(key, 16))

    def conv_w(cout, cin):
        w = jax.random.normal(next(keys), (cout, cin, 3, 3, 3), jnp.float32)
        return w / math.sqrt(27 * cin)

    def up_w(c):
        w = jax.random.normal(next(keys), (c, c, 2, 2, 2), jnp.float32)
        return w / math.sqrt(8 * c)

    def up_b(c):
        return 0.1 * jax.random.normal(next(keys), (c,), jnp.float32)

    return {
        "up3_w": up_w(512), "up3_b": up_b(512),
        "dec2_c0": conv_w(256, 256 + 512), "dec2_c1": conv_w(256, 256),
        "up2_w": up_w(256), "up2_b": up_b(256),
        "dec1_c0": conv_w(128, 128 + 256), "dec1_c1": conv_w(128, 128),
        "up1_w": up_w(128), "up1_b": up_b(128),
        "dec0_c0": conv_w(64, 64 + 128), "dec0_c1": conv_w(64, 64),
        "dec0_c2": conv_w(out_channels, 64),
    }


def prepare_kernel_params(p):
    """PyTorch-layout f32 params -> pre-transformed bf16 kernel weights."""

    def cw(w):
        # (Cout, Cin, 3,3,3) -> (3, 3*Cin, 3*Cout):
        #   [kd, kw*Cin + ci, kh*Cout + co] = w[co, ci, kd, kh, kw]
        cout, cin = w.shape[:2]
        t = jnp.transpose(w, (2, 4, 1, 3, 0))
        return t.reshape(3, 3 * cin, 3 * cout).astype(jnp.bfloat16)

    def uw(w):
        # (Cin, Cout, 2,2,2) -> (8, Cin, Cout) with p = (i*2+j)*2+k.
        cin, cout = w.shape[:2]
        t = jnp.transpose(w, (2, 3, 4, 0, 1)).reshape(8, cin, cout)
        return t.astype(jnp.bfloat16)

    def ub(b):
        return b.reshape(1, -1).astype(jnp.float32)

    return {
        "up3_w": uw(p["up3_w"]), "up3_b": ub(p["up3_b"]),
        "dec2": [cw(p["dec2_c0"]), cw(p["dec2_c1"])],
        "up2_w": uw(p["up2_w"]), "up2_b": ub(p["up2_b"]),
        "dec1": [cw(p["dec1_c0"]), cw(p["dec1_c1"])],
        "up1_w": uw(p["up1_w"]), "up1_b": ub(p["up1_b"]),
        "dec0": [cw(p["dec0_c0"]), cw(p["dec0_c1"]), cw(p["dec0_c2"])],
    }


# --------------------------------------------------------------------------
# Full forward (mirrors UNet3DDecoder.forward). Inputs/outputs are NCDHW f32.
# --------------------------------------------------------------------------
def unet3d_decoder_forward(kp, x):
    skips, enc_hidden = x
    s0, sp0 = _prep(skips[0])
    s1, sp1 = _prep(skips[1])
    s2, sp2 = _prep(skips[2])
    hf, sph = _prep(enc_hidden)
    n = s0.shape[0]

    # up_conv3 -> [skip2 ++ .] -> decoder2 (+ fused up_conv2)
    up = _interleave(up_conv2x_planes(hf, kp["up3_w"], kp["up3_b"]), sph)
    d2p = decoder_stage(s2, up, kp["dec2"], sp2,
                        up_w=kp["up2_w"], up_b=kp["up2_b"], batch_block=n)

    # [skip1 ++ .] -> decoder1 (+ fused up_conv1)
    up = _interleave(d2p, sp2)
    d1p = decoder_stage(s1, up, kp["dec1"], sp1,
                        up_w=kp["up1_w"], up_b=kp["up1_b"], batch_block=1)

    # [skip0 ++ .] -> decoder0 (3 fused convs, last one keeps IN + ReLU)
    up = _interleave(d1p, sp1)
    d0 = decoder_stage(s0, up, kp["dec0"], sp0, batch_block=1)

    D, H, W = sp0
    out = d0.reshape(n, D, H, W, -1)
    return jnp.transpose(out, (0, 4, 1, 2, 3))


# --------------------------------------------------------------------------
# Pure-JAX f32 reference of the PyTorch module (for the numerical check).
# --------------------------------------------------------------------------
def reference_forward(params, x):
    skips, enc_hidden = x
    hi = lax.Precision.HIGHEST

    def conv_in_relu(t, w):
        y = lax.conv_general_dilated(
            t, w, (1, 1, 1), ((1, 1), (1, 1), (1, 1)),
            dimension_numbers=("NCDHW", "OIDHW", "NCDHW"), precision=hi)
        mean = jnp.mean(y, axis=(2, 3, 4), keepdims=True)
        var = jnp.var(y, axis=(2, 3, 4), keepdims=True)
        return jnp.maximum((y - mean) * lax.rsqrt(var + 1e-5), 0.0)

    def up2x(t, w, b):
        n, _, d, h, wd = t.shape
        co = w.shape[1]
        y = jnp.einsum("ncdhw,coijk->nodihjwk", t, w, precision=hi)
        y = y.reshape(n, co, 2 * d, 2 * h, 2 * wd)
        return y + b[None, :, None, None, None]

    y2 = up2x(enc_hidden, params["up3_w"], params["up3_b"])
    y2 = jnp.concatenate([skips[2], y2], axis=1)
    d2 = conv_in_relu(conv_in_relu(y2, params["dec2_c0"]), params["dec2_c1"])
    y1 = up2x(d2, params["up2_w"], params["up2_b"])
    y1 = jnp.concatenate([skips[1], y1], axis=1)
    d1 = conv_in_relu(conv_in_relu(y1, params["dec1_c0"]), params["dec1_c1"])
    y0 = up2x(d1, params["up1_w"], params["up1_b"])
    y0 = jnp.concatenate([skips[0], y0], axis=1)
    d0 = conv_in_relu(conv_in_relu(conv_in_relu(
        y0, params["dec0_c0"]), params["dec0_c1"]), params["dec0_c2"])
    return d0


if __name__ == "__main__":
    key = jax.random.PRNGKey(0)
    out_channels = 4
    N = 2

    pk, k0, k1, k2, kh = jax.random.split(key, 5)
    params = init_params(pk, out_channels)
    kparams = prepare_kernel_params(params)

    # Encoder feature pyramid consistent with the module's channel counts:
    # skips[0]: 64ch @ 16^3, skips[1]: 128ch @ 8^3, skips[2]: 256ch @ 4^3,
    # enc_hidden: 512ch @ 2^3  (NCDHW, like PyTorch).
    skip0 = jax.random.normal(k0, (N, 64, 16, 16, 16), jnp.float32)
    skip1 = jax.random.normal(k1, (N, 128, 8, 8, 8), jnp.float32)
    skip2 = jax.random.normal(k2, (N, 256, 4, 4, 4), jnp.float32)
    enc_hidden = jax.random.normal(kh, (N, 512, 2, 2, 2), jnp.float32)
    x = ((skip0, skip1, skip2), enc_hidden)

    # Resolve the pltpu.roll shift convention before any kernel is traced.
    _roll_like_jnp()

    fwd = jax.jit(unet3d_decoder_forward)
    out = jax.block_until_ready(fwd(kparams, x))

    assert out.shape == (N, out_channels, 16, 16, 16), out.shape
    assert out.dtype == jnp.float32
    assert bool(jnp.all(jnp.isfinite(out)))

    # Numerical check against a pure-JAX f32 reference (bf16 matmuls in the
    # kernel -> loose relative-L2 tolerance; structural bugs give O(1) error).
    ref = jax.block_until_ready(jax.jit(reference_forward)(params, x))
    rel = float(jnp.linalg.norm(out - ref) / (jnp.linalg.norm(ref) + 1e-12))
    assert rel < 0.12, f"relative L2 error vs reference too high: {rel}"

    print("KERNEL_OK")
</pallas_src>

<mosaic_0001>
module attributes {stable_mosaic.version = 11 : i64} {
  func.func @probe(%arg0: memref<8x128xf32, #tpu.memory_space<vmem>>, %arg1: memref<8x128xf32, #tpu.memory_space<vmem>>) attributes {dimension_semantics = [], scalar_prefetch = 0 : i64, scratch_operands = 0 : i64, tpu.core_type = #tpu.core_type<tc>} {
    %c0 = arith.constant 0 : index
    %c0_0 = arith.constant 0 : index
    %0 = vector.load %arg0[%c0, %c0_0] : memref<8x128xf32, #tpu.memory_space<vmem>>, vector<8x128xf32>
    %c1_i32 = arith.constant 1 : i32
    %1 = tpu.dynamic_rotate %0 by %c1_i32 dim 0 : vector<8x128xf32>, i32 -> vector<8x128xf32>
    %c0_1 = arith.constant 0 : index
    %c0_2 = arith.constant 0 : index
    %2 = vector.load %arg1[%c0_1, %c0_2] : memref<8x128xf32, #tpu.memory_space<vmem>>, vector<8x128xf32>
    tpu.vector_store %arg1[%c0_1, %c0_2], %1 {strides = array<i32>} : memref<8x128xf32, #tpu.memory_space<vmem>>, vector<8x128xf32>,
    return
  }
}

</mosaic_0001>

<bundles_post_ra>
// kernel: tpu_custom_call.1
= control target key start
LH: loop header
LB: loop body
LE: loop exit
PB: predicated region body
PF: predicated region fallthrough
CT: control target
= control target key end

     0   :  { %6 = vsyncpa [#allocation3], 0  ;;  %s125_s0 = inlined_call_operand.hbm [shape: f32[8,128], index: 0, kind: input, shape index: {}]   ;;  %s126_s1 = inlined_call_operand.hbm [shape: f32[8,128], index: 1, kind: output, shape index: {}]  }
   0x1   :  { %7 = vsyncpa [#allocation4], 0  ;;  %s89_s6 = smov [#allocation2]   ;;  %s41_s10 = scalar_lea.hbm %s125_s0, 128 }
   0x2   :  { %s14_s7 = sshll.u32 %s89_s6, 4  ;;  %p42_p0 = scmp.ne.s32.totalorder %s125_s0, %s41_s10  ;;  %s15_s7 = int_to_ptr.vmem [resolvable:$true] %s14_s7 }
   0x3   :  { %p45_p1 = scmp.lt.u32.totalorder %s41_s10, %s125_s0 }
   0x5   :  { %p47_p2 = pnand %p45_p1, %p42_p0 }
   0x7   :  { %50 = shalt.err (!%p47_p2)
}
   0x8   :  { %s51_s15 = scalar_lea.vmem %s15_s7, 128  ;;  %p56_p4 = scmp.lt.s32.totalorder %s15_s7, %s15_s7 }
   0x9   :  { %p52_p3 = scmp.ne.s32.totalorder %s15_s7, %s51_s15  ;;  %p57_p5 = scmp.lt.s32.totalorder %s51_s15, %s51_s15 }
   0xb   :  { %p58_p6 = por %p57_p5, %p56_p4 }
   0xd   :  { %p59_p7 = pnand %p58_p6, %p52_p3 }
   0xf   :  { %62 = shalt.err (!%p59_p7)
}
  0x10   :  { %17 = dma.hbm_to_vmem [thread:$0]  %s125_s0, 128, %s15_s7, [#allocation3]  }
  0x11   :  { %85 = dma.done.wait [#allocation3], 128  }
  0x12   :  { %86 = vsyncadd [#allocation3], 4294967168  ;;  %s90_s18 = smov [#allocation5]   ;;  %v21_v0 = vld [vmem:[#allocation2] sm:$0xff] }
  0x13   :  { %s30_s19 = sshll.u32 %s90_s18, 4  ;;  %v22_v1 = vrot.slane %v21_v0, 7  ;;  %s31_s19 = int_to_ptr.vmem [resolvable:$true] %s30_s19 }
  0x14   :  { %s63_s20 = scalar_lea.vmem %s31_s19, 128  ;;  %p68_p9 = scmp.lt.s32.totalorder %s31_s19, %s31_s19 }
  0x15   :  { %23 = vst [vmem:[#allocation5] sm:$0xff] %v22_v1  ;;  %p64_p8 = scmp.ne.s32.totalorder %s31_s19, %s63_s20  ;;  %p69_p10 = scmp.lt.s32.totalorder %s63_s20, %s63_s20 }
  0x17   :  { %p70_p11 = por %p69_p10, %p68_p9 }
  0x19   :  { %p71_p12 = pnand %p70_p11, %p64_p8 }
  0x1b   :  { %74 = shalt.err (!%p71_p12)
}
  0x1c   :  { %s75_s23 = scalar_lea.hbm %s126_s1, 128 }
  0x1d   :  { %p76_p13 = scmp.ne.s32.totalorder %s126_s1, %s75_s23  ;;  %p79_p0 = scmp.lt.u32.totalorder %s75_s23, %s126_s1 }
  0x1f   :  { %p81_p1 = pnand %p79_p0, %p76_p13 }
  0x21   :  { %84 = shalt.err (!%p81_p1)
}
  0x22   :  { %33 = dma.vmem_to_hbm [thread:$0]  %s31_s19, 128, %s126_s1, [#allocation4]  }
  0x23   :  { %87 = dma.done.wait [#allocation4], 128  }
  0x24   :  { %88 = vsyncadd [#allocation4], 4294967168 }
  0x25   :  { %37 = vsyncpa [#allocation3], 1 }
  0x26   :  { %38 = vsyncpa [#allocation4], 1 }

</bundles_post_ra>
